<compile_context>
chip_gen: v6e
topology: v6e:2x2x1
jax: 0.10.0
libtpu: 0.0.40
codegen_flags: <defaults>
</compile_context>

<pallas_src>
import jax
import jax.numpy as jnp
from jax.experimental import pallas as pl
from jax.experimental.pallas import tpu as pltpu


def _round_up(a, b):
    return (a + b - 1) // b * b


def _conv_bn_relu_kernel(p_ref, w_ref, bias_ref, o_ref):
    # p_ref:    (TM, K)      bf16 im2col patches tile
    # w_ref:    (K, Coutp)   bf16 conv weight with BN scale folded in
    # bias_ref: (1, Coutp)   f32 folded BN bias
    # o_ref:    (TM, Coutp)  f32 output tile (lane-dense: Coutp multiple of 128)
    acc = jnp.dot(p_ref[...], w_ref[...], preferred_element_type=jnp.float32)
    o_ref[...] = jnp.maximum(acc + bias_ref[...], 0.0).astype(o_ref.dtype)


def input_layer_forward(x_nchw, w_oihw, gamma, beta, running_mean, running_var,
                        eps=1e-5, tm_max=512):
    """Conv2d(k=3, s=2, p=1, bias=False) + BatchNorm2d(eval) + ReLU, NCHW in/out."""
    N, Cin, H, W = x_nchw.shape
    Cout = w_oihw.shape[0]
    Ho = (H + 2 - 3) // 2 + 1
    Wo = (W + 2 - 3) // 2 + 1

    # --- glue: NCHW -> NHWC (bf16), zero-pad, im2col with patch order (kh, kw, Cin)
    x = jnp.transpose(x_nchw, (0, 2, 3, 1)).astype(jnp.bfloat16)        # NHWC
    xp = jnp.pad(x, ((0, 0), (1, 1), (1, 1), (0, 0)))
    cols = []
    for kh in range(3):
        for kw in range(3):
            cols.append(xp[:, kh:kh + 2 * Ho:2, kw:kw + 2 * Wo:2, :])   # (N,Ho,Wo,Cin)
    patches = jnp.stack(cols, axis=3)                                   # (N,Ho,Wo,9,Cin)
    K = 9 * Cin
    M = N * Ho * Wo
    patches = patches.reshape(M, K)

    # --- fold BatchNorm (inference) into the conv weight / a per-channel bias
    scale = gamma / jnp.sqrt(running_var + eps)                         # (Cout,)
    bias = beta - running_mean * scale                                  # (Cout,)
    # weight (Cout, Cin, 3, 3) -> (kh, kw, Cin, Cout) -> (K, Cout), matching patch order
    w_mat = jnp.transpose(w_oihw, (2, 3, 1, 0)).reshape(K, Cout).astype(jnp.float32)
    w_mat = w_mat * scale[None, :]                                      # BN scale folded in

    # --- pad Cout to a multiple of 128 so output stores are lane-dense
    Coutp = _round_up(Cout, 128)
    w_mat = jnp.pad(w_mat, ((0, 0), (0, Coutp - Cout))).astype(jnp.bfloat16)
    bias2 = jnp.pad(bias.astype(jnp.float32), (0, Coutp - Cout)).reshape(1, Coutp)

    # --- M tile: large (up to 512 rows) to amortize per-grid-step overhead
    tm = min(tm_max, _round_up(M, 128))
    Mp = _round_up(M, tm)
    if Mp != M:
        patches = jnp.pad(patches, ((0, Mp - M), (0, 0)))

    out = pl.pallas_call(
        _conv_bn_relu_kernel,
        out_shape=jax.ShapeDtypeStruct((Mp, Coutp), jnp.float32),
        grid_spec=pltpu.PrefetchScalarGridSpec(
            num_scalar_prefetch=0,
            grid=(Mp // tm,),
            in_specs=[
                pl.BlockSpec((tm, K), lambda i: (i, 0)),
                pl.BlockSpec((K, Coutp), lambda i: (0, 0)),
                pl.BlockSpec((1, Coutp), lambda i: (0, 0)),
            ],
            out_specs=pl.BlockSpec((tm, Coutp), lambda i: (i, 0)),
        ),
        compiler_params=pltpu.CompilerParams(
            dimension_semantics=("parallel",),
            allow_input_fusion=[True, False, False],
        ),
    )(patches, w_mat, bias2)

    out = out[:M, :Cout].reshape(N, Ho, Wo, Cout)
    return jnp.transpose(out, (0, 3, 1, 2))  # back to NCHW


if __name__ == "__main__":
    key = jax.random.PRNGKey(0)
    k1, k2, k3, k4, k5, k6 = jax.random.split(key, 6)

    N, Cin, H, W = 2, 4, 16, 16
    Cout = 32

    x = jax.random.normal(k1, (N, Cin, H, W), dtype=jnp.float32)
    w = jax.random.normal(k2, (Cout, Cin, 3, 3), dtype=jnp.float32) * 0.1
    gamma = jax.random.uniform(k3, (Cout,), minval=0.5, maxval=1.5, dtype=jnp.float32)
    beta = jax.random.normal(k4, (Cout,), dtype=jnp.float32) * 0.1
    running_mean = jax.random.normal(k5, (Cout,), dtype=jnp.float32) * 0.1
    running_var = jax.random.uniform(k6, (Cout,), minval=0.5, maxval=1.5, dtype=jnp.float32)

    y = input_layer_forward(x, w, gamma, beta, running_mean, running_var)
    y = jax.block_until_ready(y)

    # pure-JAX f32 reference for correctness (kernel uses bf16 operands -> looser tol)
    eps = 1e-5
    y_conv = jax.lax.conv_general_dilated(
        x, w, window_strides=(2, 2), padding=((1, 1), (1, 1)),
        dimension_numbers=("NCHW", "OIHW", "NCHW"))
    sc = gamma / jnp.sqrt(running_var + eps)
    bs = beta - running_mean * sc
    y_ref = jnp.maximum(y_conv * sc[None, :, None, None] + bs[None, :, None, None], 0.0)

    assert y.shape == (N, Cout, H // 2, W // 2), y.shape
    assert jnp.allclose(y, y_ref, atol=3e-2, rtol=3e-2), float(jnp.max(jnp.abs(y - y_ref)))
    print("KERNEL_OK")
</pallas_src>

<mosaic_0001>
module attributes {stable_mosaic.version = 11 : i64} {
  func.func @_conv_bn_relu_kernel(%arg0: i32, %arg1: memref<128x36xbf16, #tpu.memory_space<vmem>>, %arg2: memref<36x128xbf16, #tpu.memory_space<vmem>>, %arg3: memref<1x128xf32, #tpu.memory_space<vmem>>, %arg4: memref<128x128xf32, #tpu.memory_space<vmem>>) attributes {dimension_semantics = [#tpu.dimension_semantics<parallel>], iteration_bounds = array<i64: 1>, scalar_prefetch = 0 : i64, scratch_operands = 0 : i64, tpu.core_type = #tpu.core_type<tc>, window_params = [{transform_indices = @transform_0, window_bounds = array<i64: 128, 36>}, {pipeline_mode = #tpu.pipeline_mode<synchronous>, transform_indices = @transform_1, window_bounds = array<i64: 36, 128>}, {pipeline_mode = #tpu.pipeline_mode<synchronous>, transform_indices = @transform_2, window_bounds = array<i64: 1, 128>}, {transform_indices = @transform_3, window_bounds = array<i64: 128, 128>}]} {
    %c0 = arith.constant 0 : index
    %c0_0 = arith.constant 0 : index
    %0 = vector.load %arg1[%c0, %c0_0] : memref<128x36xbf16, #tpu.memory_space<vmem>>, vector<128x36xbf16>
    %c0_1 = arith.constant 0 : index
    %c0_2 = arith.constant 0 : index
    %1 = vector.load %arg2[%c0_1, %c0_2] : memref<36x128xbf16, #tpu.memory_space<vmem>>, vector<36x128xbf16>
    %cst = arith.constant dense<0.000000e+00> : vector<128x128xf32>
    %2 = tpu.matmul %0, %1, %cst {dimension_numbers = #tpu.dot_dimension_numbers<[1], [0], [0], [1], [0, 0, 1, 1], [], []>} : vector<128x36xbf16>, vector<36x128xbf16>, vector<128x128xf32> -> vector<128x128xf32>
    %c0_3 = arith.constant 0 : index
    %c0_4 = arith.constant 0 : index
    %3 = vector.load %arg3[%c0_3, %c0_4] : memref<1x128xf32, #tpu.memory_space<vmem>>, vector<1x128xf32>
    %4 = vector.broadcast %3 : vector<1x128xf32> to vector<128x128xf32>
    %5 = arith.addf %2, %4 : vector<128x128xf32>
    %cst_5 = arith.constant 0.000000e+00 : f32
    %6 = vector.broadcast %cst_5 : f32 to vector<128x128xf32>
    %7 = arith.maximumf %5, %6 : vector<128x128xf32>
    %c0_6 = arith.constant 0 : index
    %c0_7 = arith.constant 0 : index
    %8 = vector.load %arg4[%c0_6, %c0_7] : memref<128x128xf32, #tpu.memory_space<vmem>>, vector<128x128xf32>
    tpu.vector_store %arg4[%c0_6, %c0_7], %7 {strides = array<i32>} : memref<128x128xf32, #tpu.memory_space<vmem>>, vector<128x128xf32>,
    return
  }
  func.func @transform_0(%arg0: i32) -> (i32, i32) {
    %c0_i32 = arith.constant 0 : i32
    %c0_i32_0 = arith.constant 0 : i32
    return %arg0, %c0_i32 : i32, i32
  }
  func.func @transform_1(%arg0: i32) -> (i32, i32) {
    %c0_i32 = arith.constant 0 : i32
    %c0_i32_0 = arith.constant 0 : i32
    %c0_i32_1 = arith.constant 0 : i32
    return %c0_i32, %c0_i32_0 : i32, i32
  }
  func.func @transform_2(%arg0: i32) -> (i32, i32) {
    %c0_i32 = arith.constant 0 : i32
    %c0_i32_0 = arith.constant 0 : i32
    %c0_i32_1 = arith.constant 0 : i32
    return %c0_i32, %c0_i32_0 : i32, i32
  }
  func.func @transform_3(%arg0: i32) -> (i32, i32) {
    %c0_i32 = arith.constant 0 : i32
    %c0_i32_0 = arith.constant 0 : i32
    return %arg0, %c0_i32 : i32, i32
  }
}

</mosaic_0001>

<bundles_post_ra>
// kernel: tpu_custom_call.1
= control target key start
LH: loop header
LB: loop body
LE: loop exit
PB: predicated region body
PF: predicated region fallthrough
CT: control target
= control target key end

     0   :  { %vm124_vm0 = vcmask 1041408   ;;  %vm99_vm1 = vcmask 293888   ;;  %s440_s0 = inlined_call_operand.vmem [shape: bf16[128,36], index: 0, kind: input, shape index: {}]   ;;  %s441_s1 = inlined_call_operand.vmem [shape: bf16[36,128], index: 1, kind: input, shape index: {}]   ;;  %s442_s2 = inlined_call_operand.vmem [shape: f32[1,128], index: 2, kind: input, shape index: {}]   ;;  %s443_s3 = inlined_call_operand.hbm [shape: f32[128,128], index: 3, kind: output, shape index: {}]  }
   0x1   :  { %v337_v0 = vld [vmem:[%s441_s1 + $0x10] ss:$0 sps:$4 sm:$0x33]   ;;  %v338_v1 = vld [vmem:[%s441_s1 + $0x8] sm:$0xff]   ;;  %v339_v3 = vld [vmem:[%s441_s1] sm:$0xff]  }
   0x2   :  { %332 = vmatprep.subr.msk.bf16.mxu0 %vm124_vm0, %v337_v0  ;;  %333 = vmatprep.subr.msk.bf16.mxu1 %vm124_vm0, %v337_v0  ;;  %v126_v2 = vsel %vm124_vm0, %v337_v0, 0  ;;  %v340_v4 = vld [vmem:[%s440_s0] sm:$0xff]   ;;  %v342_v6 = vld [vmem:[%s440_s0 + $0x8] sm:$0xff]   ;;  %v344_v8 = vld [vmem:[%s440_s0 + $0x10] sm:$0xff]  }
   0x3   :  { %305 = vmatpush3.bf16.msra.mxu0 %v126_v2  ;;  %329 = vmatpush3.bf16.msra.mxu1 %v126_v2  ;;  %v341_v5 = vld [vmem:[%s440_s0 + $0x20] sm:$0xff]   ;;  %v343_v7 = vld [vmem:[%s440_s0 + $0x28] sm:$0xff]   ;;  %v345_v9 = vld [vmem:[%s440_s0 + $0x30] sm:$0xff]  }
   0x4   :  { %306 = vmatprep.subr.bf16.mxu0 %v338_v1  ;;  %327 = vmatprep.subr.bf16.mxu1 %v338_v1 }
   0x5   :  { %310 = vmatprep.mubr.msk.bf16.mxu0 %vm99_vm1, %v340_v4  ;;  %318 = vmatprep.mubr.msk.bf16.mxu1 %vm99_vm1, %v341_v5 }
   0x7   :  { %307 = vmatpush3.bf16.msra.mxu0 %v338_v1  ;;  %330 = vmatpush3.bf16.msra.mxu1 %v338_v1 }
   0x8   :  { %308 = vmatprep.subr.bf16.mxu0 %v339_v3  ;;  %328 = vmatprep.subr.bf16.mxu1 %v339_v3 }
   0xb   :  { %309 = vmatpush3.bf16.msra.mxu0 %v339_v3  ;;  %331 = vmatpush3.bf16.msra.mxu1 %v339_v3 }
   0xc   :  { %8 = vsyncpa [#allocation3], 0  ;;  %v346_v10 = vld [vmem:[%s440_s0 + $0x18] sm:$0xff]   ;;  %v273_v12 = vld [vmem:[%s442_s2] ss:$0 sm:$0xff] }
   0xd   :  { %v347_v11 = vld [vmem:[%s440_s0 + $0x38] sm:$0xff]   ;;  %s370_s0 = smov [#allocation2]  }
   0xe   :  { %311 = vmatmul.mubr.msk.bf16.vlgmr.msra.gmra.mxu0 %vm99_vm1, %v342_v6  ;;  %319 = vmatmul.mubr.msk.bf16.vlgmr.msra.gmra.mxu1 %vm99_vm1, %v343_v7  ;;  %s262_s2 = sshll.u32 %s370_s0, 4  ;;  %s263_s2 = int_to_ptr.vmem [resolvable:$true] %s262_s2 }
   0xf   :  { %314 = vmatprep.mubr.msk.bf16.mxu0 %vm99_vm1, %v344_v8  ;;  %322 = vmatprep.mubr.msk.bf16.mxu1 %vm99_vm1, %v345_v9  ;;  %s348_s8 = scalar_lea.vmem %s263_s2, 2048  ;;  %p353_p1 = scmp.lt.s32.totalorder %s263_s2, %s263_s2 }
  0x10   :  { %p349_p0 = scmp.ne.s32.totalorder %s263_s2, %s348_s8  ;;  %p354_p2 = scmp.lt.s32.totalorder %s348_s8, %s348_s8 }
  0x12   :  { %p355_p3 = por %p354_p2, %p353_p1 }
  0x14   :  { %p356_p4 = pnand %p355_p3, %p349_p0 }
  0x16   :  { %315 = vmatmul.mubr.msk.bf16.gmra.mxu0 %vm99_vm1, %v346_v10  ;;  %323 = vmatmul.mubr.msk.bf16.gmra.mxu1 %vm99_vm1, %v347_v11 }
  0xce   :  { %v312_v13 = vpop.f32.mrf.mxu0  ;;  %v320_v14 = vpop.f32.mrf.mxu1 }
  0xcf   :  { %v171_v15 = vadd.f32 %v312_v13, %v273_v12  ;;  %v203_v16 = vadd.f32 %v320_v14, %v273_v12 }
  0xd0   :  { %v162_v17 = vpop.f32.mrf.mxu0  ;;  %v194_v18 = vpop.f32.mrf.mxu1 }
  0xd1   :  { %v227_v19 = vmax.f32 %v171_v15, 0.0  ;;  %v235_v20 = vmax.f32 %v203_v16, 0.0  ;;  %v163_v21 = vadd.f32 %v273_v12, %v162_v17  ;;  %v195_v22 = vadd.f32 %v273_v12, %v194_v18 }
  0xd2   :  { %v313_v23 = vpop.f32.mrf.mxu0  ;;  %v321_v24 = vpop.f32.mrf.mxu1 }
  0xd3   :  { %243 = vst [vmem:[#allocation2 + $0x10] sm:$0xff] %v227_v19  ;;  %251 = vst [vmem:[#allocation2 + $0x50] sm:$0xff] %v235_v20  ;;  %v225_v25 = vmax.f32 %v163_v21, 0.0  ;;  %v233_v26 = vmax.f32 %v195_v22, 0.0  ;;  %v174_v27 = vadd.f32 %v313_v23, %v273_v12  ;;  %v206_v28 = vadd.f32 %v321_v24, %v273_v12 }
  0xd4   :  { %v165_v29 = vpop.f32.mrf.mxu0  ;;  %v197_v30 = vpop.f32.mrf.mxu1 }
  0xd5   :  { %241 = vst [vmem:[#allocation2] sm:$0xff] %v225_v25  ;;  %249 = vst [vmem:[#allocation2 + $0x40] sm:$0xff] %v233_v26  ;;  %v228_v31 = vmax.f32 %v174_v27, 0.0  ;;  %v236_v32 = vmax.f32 %v206_v28, 0.0  ;;  %v166_v33 = vadd.f32 %v273_v12, %v165_v29  ;;  %v198_v34 = vadd.f32 %v273_v12, %v197_v30 }
  0xd6   :  { %v316_v35 = vpop.f32.mrf.mxu0  ;;  %v324_v36 = vpop.f32.mrf.mxu1 }
  0xd7   :  { %244 = vst [vmem:[#allocation2 + $0x18] sm:$0xff] %v228_v31  ;;  %252 = vst [vmem:[#allocation2 + $0x58] sm:$0xff] %v236_v32  ;;  %v226_v37 = vmax.f32 %v166_v33, 0.0  ;;  %v234_v38 = vmax.f32 %v198_v34, 0.0  ;;  %v187_v39 = vadd.f32 %v316_v35, %v273_v12  ;;  %v219_v40 = vadd.f32 %v324_v36, %v273_v12 }
  0xd8   :  { %v178_v41 = vpop.f32.mrf.mxu0  ;;  %v210_v42 = vpop.f32.mrf.mxu1 }
  0xd9   :  { %242 = vst [vmem:[#allocation2 + $0x8] sm:$0xff] %v226_v37  ;;  %250 = vst [vmem:[#allocation2 + $0x48] sm:$0xff] %v234_v38  ;;  %v231_v43 = vmax.f32 %v187_v39, 0.0  ;;  %v239_v44 = vmax.f32 %v219_v40, 0.0  ;;  %v179_v45 = vadd.f32 %v273_v12, %v178_v41  ;;  %v211_v46 = vadd.f32 %v273_v12, %v210_v42 }
  0xda   :  { %v317_v47 = vpop.f32.mrf.mxu0  ;;  %v325_v48 = vpop.f32.mrf.mxu1 }
  0xdb   :  { %247 = vst [vmem:[#allocation2 + $0x30] sm:$0xff] %v231_v43  ;;  %255 = vst [vmem:[#allocation2 + $0x70] sm:$0xff] %v239_v44  ;;  %v229_v49 = vmax.f32 %v179_v45, 0.0  ;;  %v237_v50 = vmax.f32 %v211_v46, 0.0  ;;  %v190_v51 = vadd.f32 %v317_v47, %v273_v12  ;;  %v222_v52 = vadd.f32 %v325_v48, %v273_v12 }
  0xdc   :  { %v181_v53 = vpop.f32.mrf.mxu0  ;;  %v213_v54 = vpop.f32.mrf.mxu1 }
  0xdd   :  { %245 = vst [vmem:[#allocation2 + $0x20] sm:$0xff] %v229_v49  ;;  %253 = vst [vmem:[#allocation2 + $0x60] sm:$0xff] %v237_v50  ;;  %v232_v55 = vmax.f32 %v190_v51, 0.0  ;;  %v240_v56 = vmax.f32 %v222_v52, 0.0  ;;  %v182_v57 = vadd.f32 %v273_v12, %v181_v53  ;;  %v214_v58 = vadd.f32 %v273_v12, %v213_v54 }
  0xdf   :  { %248 = vst [vmem:[#allocation2 + $0x38] sm:$0xff] %v232_v55  ;;  %256 = vst [vmem:[#allocation2 + $0x78] sm:$0xff] %v240_v56  ;;  %v230_v59 = vmax.f32 %v182_v57, 0.0  ;;  %v238_v60 = vmax.f32 %v214_v58, 0.0 }
  0xe1   :  { %246 = vst [vmem:[#allocation2 + $0x28] sm:$0xff] %v230_v59  ;;  %254 = vst [vmem:[#allocation2 + $0x68] sm:$0xff] %v238_v60 }
  0xe2   :  { %359 = shalt.err (!%p356_p4)
}
  0xe3   :  { %s371_s9 = smov 128   ;;  %s372_s10 = smov 8  }
  0xe4   :  { %268 = dma.vmem_to_hbm [thread:$0]  %s263_s2, 2048, %s443_s3, [#allocation3], %s371_s9, %s371_s9, %s372_s10  }
  0xe5   :  { %368 = dma.done.wait [#allocation3], 2048  }
  0xe6   :  { %369 = vsyncadd [#allocation3], 4294965248 }
  0xe7   :  { %272 = vsyncpa [#allocation3], 1 }

</bundles_post_ra>
